<compile_context>
chip_gen: v5e
topology: v5e:2x2
jax: 0.10.0
libtpu: 0.0.40
codegen_flags: <defaults>
</compile_context>

<pallas_src>
import functools

import jax
import jax.numpy as jnp
from jax.experimental import pallas as pl
from jax.experimental.pallas import tpu as pltpu

INPUT_DIM = 3
TIME_EMB_DIM = 128
HIDDEN_DIM = 256

_MAX_TB = 2048                 # ~10-15 MiB live at TB=2048 -> fine under 32 MiB scoped VMEM
_VMEM_LIMIT_BYTES = 32 << 20


def _round_up(n, m):
    return ((n + m - 1) // m) * m


def _silu(x):
    # silu(x) = x*sigmoid(x) == 0.5*x*(1+tanh(x/2)); tanh is a single EUP op.
    return 0.5 * x * (1.0 + jnp.tanh(0.5 * x))


# -----------------------------------------------------------------------------
# In-kernel math (shared by per-row-t and shared-t paths via broadcasting)
# -----------------------------------------------------------------------------
def _time_emb_rows(t2d, freqs2, phase, te_w1, te_b1, te_w2, te_b2):
    """sin(t*1e-3*[f,f] + [0,pi/2]) == [sin(tf), cos(tf)] -> Linear -> SiLU -> Linear."""
    args = (t2d * 0.001) * freqs2 + phase                              # (rows, 128)
    feats = jnp.sin(args)                                              # one 128-lane EUP pass
    h = jnp.dot(feats.astype(te_w1.dtype), te_w1,
                preferred_element_type=jnp.float32) + te_b1
    h = _silu(h)
    return jnp.dot(h.astype(te_w2.dtype), te_w2,
                   preferred_element_type=jnp.float32) + te_b2         # (rows, 128) f32


def _main_net(x, temb, m_w1x, m_w1t, m_b1, m_w2, m_b2, m_w3, m_b3):
    """main_net(concat([x, temb])) with the concat expressed as a split matmul."""
    h = jnp.dot(temb.astype(m_w1t.dtype), m_w1t,
                preferred_element_type=jnp.float32) + m_b1             # (rows|1, 256)
    # K=3 branch fused: one traversal of the (TB,256) tile (VPU broadcast-FMAs).
    h = h + (x[:, 0:1] * m_w1x[0:1, :]
             + x[:, 1:2] * m_w1x[1:2, :]
             + x[:, 2:3] * m_w1x[2:3, :])
    h = _silu(h)
    h = jnp.dot(h.astype(m_w2.dtype), m_w2,
                preferred_element_type=jnp.float32) + m_b2
    h = _silu(h)
    return jnp.dot(h.astype(m_w3.dtype), m_w3,
                   preferred_element_type=jnp.float32) + m_b3


# -----------------------------------------------------------------------------
# Kernel (single kernel for both t layouts; t block is (TB,1) or (1,1))
# -----------------------------------------------------------------------------
def mlp_kernel(
    x_ref,        # (TB, INPUT_DIM)
    t_ref,        # (TB, 1)  per-row t   |   (1, 1)  shared t
    freqs2_ref,   # (1, TIME_EMB_DIM)
    phase_ref,    # (1, TIME_EMB_DIM)
    te_w1_ref,    # (TIME_EMB_DIM, TIME_EMB_DIM)
    te_b1_ref,    # (1, TIME_EMB_DIM)
    te_w2_ref,    # (TIME_EMB_DIM, TIME_EMB_DIM)
    te_b2_ref,    # (1, TIME_EMB_DIM)
    m_w1x_ref,    # (INPUT_DIM, HIDDEN_DIM)   f32, VPU path
    m_w1t_ref,    # (TIME_EMB_DIM, HIDDEN_DIM)
    m_b1_ref,     # (1, HIDDEN_DIM)
    m_w2_ref,     # (HIDDEN_DIM, HIDDEN_DIM)
    m_b2_ref,     # (1, HIDDEN_DIM)
    m_w3_ref,     # (HIDDEN_DIM, INPUT_DIM)
    m_b3_ref,     # (1, INPUT_DIM)
    out_ref,      # (TB, INPUT_DIM)
):
    temb = _time_emb_rows(t_ref[...], freqs2_ref[...], phase_ref[...],
                          te_w1_ref[...], te_b1_ref[...],
                          te_w2_ref[...], te_b2_ref[...])
    out = _main_net(x_ref[...], temb,
                    m_w1x_ref[...], m_w1t_ref[...], m_b1_ref[...],
                    m_w2_ref[...], m_b2_ref[...],
                    m_w3_ref[...], m_b3_ref[...])
    out_ref[...] = out.astype(out_ref.dtype)


# -----------------------------------------------------------------------------
# Parameters / wrapper
# -----------------------------------------------------------------------------
def init_params(key):
    """Deterministic synthetic parameters, shapes as in MLPModel.__init__."""
    ks = jax.random.split(key, 11)
    s = 0.05
    return {
        "pos_freqs": jax.random.normal(ks[0], (1, TIME_EMB_DIM // 2), jnp.float32) * 0.1,
        # weights stored [in, out] (transposed vs torch Linear)
        "te_w1": jax.random.normal(ks[1], (TIME_EMB_DIM, TIME_EMB_DIM), jnp.float32) * s,
        "te_b1": jax.random.normal(ks[2], (TIME_EMB_DIM,), jnp.float32) * s,
        "te_w2": jax.random.normal(ks[3], (TIME_EMB_DIM, TIME_EMB_DIM), jnp.float32) * s,
        "te_b2": jax.random.normal(ks[4], (TIME_EMB_DIM,), jnp.float32) * s,
        "m_w1": jax.random.normal(ks[5], (INPUT_DIM + TIME_EMB_DIM, HIDDEN_DIM), jnp.float32) * s,
        "m_b1": jax.random.normal(ks[6], (HIDDEN_DIM,), jnp.float32) * s,
        "m_w2": jax.random.normal(ks[7], (HIDDEN_DIM, HIDDEN_DIM), jnp.float32) * s,
        "m_b2": jax.random.normal(ks[8], (HIDDEN_DIM,), jnp.float32) * s,
        "m_w3": jax.random.normal(ks[9], (HIDDEN_DIM, INPUT_DIM), jnp.float32) * s,
        "m_b3": jax.random.normal(ks[10], (INPUT_DIM,), jnp.float32) * s,
    }


@functools.partial(jax.jit, static_argnames=("use_bf16", "tb"))
def mlp_forward(params, x, t, use_bf16=True, tb=None):
    """Pallas-backed forward matching MLPModel.forward(x, t)."""
    B = x.shape[0]
    x = x.astype(jnp.float32)
    t = jnp.asarray(t, jnp.float32)
    if t.ndim == 0:
        t = t[None]
    shared_t = t.shape[0] == 1          # torch `time_emb.expand(x.shape[0], -1)` branch

    # ---- batch tile choice & padding -------------------------------------
    if tb is None:
        # Big tiles amortize per-step overhead & weight re-streaming, but cap at
        # ceil(B/2) so the grid has >=2 steps (v7x 2 TCs / megacore) whenever B > 8.
        tb = max(8, min(_MAX_TB, _round_up(-(-B // 2), 8)))
    tb = max(8, _round_up(tb, 8))
    b_pad = _round_up(B, tb)
    if b_pad != B:
        x = jnp.pad(x, ((0, b_pad - B), (0, 0)))
    grid = (b_pad // tb,)

    # ---- parameter prep (weights [in,out]; bf16 MXU operands by default) ----
    wdt = jnp.bfloat16 if use_bf16 else jnp.float32
    freqs = params["pos_freqs"].astype(jnp.float32)                       # (1, 64)
    freqs2 = jnp.concatenate([freqs, freqs], axis=-1)                     # (1, 128)
    phase = jnp.concatenate([jnp.zeros_like(freqs),
                             jnp.full_like(freqs, jnp.pi / 2)], axis=-1)  # (1, 128)
    te_w1 = params["te_w1"].astype(wdt)
    te_w2 = params["te_w2"].astype(wdt)
    m_w1t = params["m_w1"][INPUT_DIM:, :].astype(wdt)
    m_w2 = params["m_w2"].astype(wdt)
    m_w3 = params["m_w3"].astype(wdt)
    m_w1x = params["m_w1"][:INPUT_DIM, :].astype(jnp.float32)             # VPU path stays f32
    te_b1 = params["te_b1"].reshape(1, -1).astype(jnp.float32)
    te_b2 = params["te_b2"].reshape(1, -1).astype(jnp.float32)
    m_b1 = params["m_b1"].reshape(1, -1).astype(jnp.float32)
    m_b2 = params["m_b2"].reshape(1, -1).astype(jnp.float32)
    m_b3 = params["m_b3"].reshape(1, -1).astype(jnp.float32)

    # ---- t layout: (b_pad,1) per-row tiles, or a single resident (1,1) ------
    if shared_t:
        t2d = t.reshape(1, 1)
        t_spec = pl.BlockSpec((1, 1), lambda i: (0, 0))
    else:
        t2d = t.reshape(B, 1)
        if b_pad != B:
            t2d = jnp.pad(t2d, ((0, b_pad - B), (0, 0)))
        t_spec = pl.BlockSpec((tb, 1), lambda i: (i, 0))

    def resident(a):  # full-size block, same index every step -> fetched once, VMEM-resident
        return pl.BlockSpec(a.shape, lambda i: (0, 0))

    compiler_params = pltpu.CompilerParams(
        dimension_semantics=("parallel",),
        vmem_limit_bytes=_VMEM_LIMIT_BYTES,
    )

    # ---- cost estimate (advisory) -------------------------------------------
    flops_per_row = 2 * (
        (0 if shared_t else 2 * TIME_EMB_DIM * TIME_EMB_DIM)
        + TIME_EMB_DIM * HIDDEN_DIM
        + INPUT_DIM * HIDDEN_DIM
        + HIDDEN_DIM * HIDDEN_DIM
        + HIDDEN_DIM * INPUT_DIM
    )
    trans_per_row = (0 if shared_t else 2 * TIME_EMB_DIM) + 2 * HIDDEN_DIM
    weight_bytes = sum(
        int(a.size) * a.dtype.itemsize
        for a in (te_w1, te_w2, m_w1t, m_w2, m_w3, m_w1x,
                  te_b1, te_b2, m_b1, m_b2, m_b3, freqs2, phase)
    )
    io_bytes = int(x.size) * 4 + b_pad * INPUT_DIM * 4 + int(t2d.size) * 4
    cost = pl.CostEstimate(
        flops=int(flops_per_row * b_pad),
        transcendentals=int(trans_per_row * b_pad),
        bytes_accessed=int(weight_bytes + io_bytes),
    )

    in_specs = [
        pl.BlockSpec((tb, INPUT_DIM), lambda i: (i, 0)),   # x
        t_spec,                                            # t (per-row or shared)
        resident(freqs2), resident(phase),
        resident(te_w1), resident(te_b1), resident(te_w2), resident(te_b2),
        resident(m_w1x), resident(m_w1t), resident(m_b1),
        resident(m_w2), resident(m_b2), resident(m_w3), resident(m_b3),
    ]

    out = pl.pallas_call(
        mlp_kernel,
        out_shape=jax.ShapeDtypeStruct((b_pad, INPUT_DIM), jnp.float32),
        grid=grid,
        in_specs=in_specs,
        out_specs=pl.BlockSpec((tb, INPUT_DIM), lambda i: (i, 0)),
        compiler_params=compiler_params,
        cost_estimate=cost,
    )(x, t2d, freqs2, phase, te_w1, te_b1, te_w2, te_b2,
      m_w1x, m_w1t, m_b1, m_w2, m_b2, m_w3, m_b3)
    return out[:B]


# -----------------------------------------------------------------------------
# Pure-JAX reference mirroring the PyTorch forward exactly
# -----------------------------------------------------------------------------
def ref_forward(params, x, t):
    t = jnp.asarray(t, jnp.float32)
    if t.ndim == 0:
        t = t[None]
    args = (t * 0.001)[:, None] * params["pos_freqs"]
    feats = jnp.concatenate([jnp.sin(args), jnp.cos(args)], axis=-1)
    h = feats @ params["te_w1"] + params["te_b1"]
    h = h * jax.nn.sigmoid(h)
    temb = h @ params["te_w2"] + params["te_b2"]
    if temb.shape[0] != x.shape[0]:
        temb = jnp.broadcast_to(temb, (x.shape[0], temb.shape[1]))
    xt = jnp.concatenate([x, temb], axis=1)
    h = xt @ params["m_w1"] + params["m_b1"]
    h = h * jax.nn.sigmoid(h)
    h = h @ params["m_w2"] + params["m_b2"]
    h = h * jax.nn.sigmoid(h)
    return h @ params["m_w3"] + params["m_b3"]


if __name__ == "__main__":
    key = jax.random.PRNGKey(0)
    k_p, k_x, k_t = jax.random.split(key, 3)
    params = init_params(k_p)

    # 1) per-row timesteps, strict f32 path (tight tolerance)
    B = 16
    x = jax.random.normal(k_x, (B, INPUT_DIM), jnp.float32)
    t = jax.random.uniform(k_t, (B,), jnp.float32, minval=0.0, maxval=1000.0)
    ref = ref_forward(params, x, t)
    out_f32 = jax.block_until_ready(mlp_forward(params, x, t, use_bf16=False))
    assert out_f32.shape == (B, INPUT_DIM)
    assert jnp.allclose(out_f32, ref, atol=1e-4, rtol=1e-4), (
        f"f32 max abs err {float(jnp.max(jnp.abs(out_f32 - ref)))}"
    )

    # 2) default bf16-MXU path (f32 accumulation) — looser tolerance
    out_bf16 = jax.block_until_ready(mlp_forward(params, x, t))
    assert jnp.allclose(out_bf16, ref, atol=5e-2, rtol=5e-2), (
        f"bf16 max abs err {float(jnp.max(jnp.abs(out_bf16 - ref)))}"
    )

    # 3) shared scalar timestep (torch `expand` branch), batch not a tile multiple
    B2 = 20
    x2 = jax.random.normal(k_x, (B2, INPUT_DIM), jnp.float32)
    t_scalar = jnp.float32(37.0)
    ref2 = ref_forward(params, x2, t_scalar)
    out2 = jax.block_until_ready(mlp_forward(params, x2, t_scalar, tb=8))
    assert out2.shape == (B2, INPUT_DIM)
    assert jnp.allclose(out2, ref2, atol=5e-2, rtol=5e-2), (
        f"shared-t max abs err {float(jnp.max(jnp.abs(out2 - ref2)))}"
    )

    print("KERNEL_OK")
</pallas_src>

<mosaic_0001>
module attributes {stable_mosaic.version = 11 : i64} {
  func.func @mlp_kernel(%arg0: i32, %arg1: memref<8x3xf32, #tpu.memory_space<vmem>>, %arg2: memref<8x1xf32, #tpu.memory_space<vmem>>, %arg3: memref<1x128xf32, #tpu.memory_space<vmem>>, %arg4: memref<1x128xf32, #tpu.memory_space<vmem>>, %arg5: memref<128x128xf32, #tpu.memory_space<vmem>>, %arg6: memref<1x128xf32, #tpu.memory_space<vmem>>, %arg7: memref<128x128xf32, #tpu.memory_space<vmem>>, %arg8: memref<1x128xf32, #tpu.memory_space<vmem>>, %arg9: memref<3x256xf32, #tpu.memory_space<vmem>>, %arg10: memref<128x256xf32, #tpu.memory_space<vmem>>, %arg11: memref<1x256xf32, #tpu.memory_space<vmem>>, %arg12: memref<256x256xf32, #tpu.memory_space<vmem>>, %arg13: memref<1x256xf32, #tpu.memory_space<vmem>>, %arg14: memref<256x3xf32, #tpu.memory_space<vmem>>, %arg15: memref<1x3xf32, #tpu.memory_space<vmem>>, %arg16: memref<8x3xf32, #tpu.memory_space<vmem>>) attributes {dimension_semantics = [#tpu.dimension_semantics<parallel>], iteration_bounds = array<i64: 2>, scalar_prefetch = 0 : i64, scratch_operands = 0 : i64, tpu.core_type = #tpu.core_type<tc>, window_params = [{transform_indices = @transform_0, window_bounds = array<i64: 8, 3>}, {transform_indices = @transform_1, window_bounds = array<i64: 8, 1>}, {pipeline_mode = #tpu.pipeline_mode<synchronous>, transform_indices = @transform_2, window_bounds = array<i64: 1, 128>}, {pipeline_mode = #tpu.pipeline_mode<synchronous>, transform_indices = @transform_3, window_bounds = array<i64: 1, 128>}, {pipeline_mode = #tpu.pipeline_mode<synchronous>, transform_indices = @transform_4, window_bounds = array<i64: 128, 128>}, {pipeline_mode = #tpu.pipeline_mode<synchronous>, transform_indices = @transform_5, window_bounds = array<i64: 1, 128>}, {pipeline_mode = #tpu.pipeline_mode<synchronous>, transform_indices = @transform_6, window_bounds = array<i64: 128, 128>}, {pipeline_mode = #tpu.pipeline_mode<synchronous>, transform_indices = @transform_7, window_bounds = array<i64: 1, 128>}, {pipeline_mode = #tpu.pipeline_mode<synchronous>, transform_indices = @transform_8, window_bounds = array<i64: 3, 256>}, {pipeline_mode = #tpu.pipeline_mode<synchronous>, transform_indices = @transform_9, window_bounds = array<i64: 128, 256>}, {pipeline_mode = #tpu.pipeline_mode<synchronous>, transform_indices = @transform_10, window_bounds = array<i64: 1, 256>}, {pipeline_mode = #tpu.pipeline_mode<synchronous>, transform_indices = @transform_11, window_bounds = array<i64: 256, 256>}, {pipeline_mode = #tpu.pipeline_mode<synchronous>, transform_indices = @transform_12, window_bounds = array<i64: 1, 256>}, {pipeline_mode = #tpu.pipeline_mode<synchronous>, transform_indices = @transform_13, window_bounds = array<i64: 256, 3>}, {pipeline_mode = #tpu.pipeline_mode<synchronous>, transform_indices = @transform_14, window_bounds = array<i64: 1, 3>}, {transform_indices = @transform_15, window_bounds = array<i64: 8, 3>}]} {
    %c0 = arith.constant 0 : index
    %c0_0 = arith.constant 0 : index
    %0 = vector.load %arg2[%c0, %c0_0] : memref<8x1xf32, #tpu.memory_space<vmem>>, vector<8x1xf32>
    %c0_1 = arith.constant 0 : index
    %c0_2 = arith.constant 0 : index
    %1 = vector.load %arg3[%c0_1, %c0_2] : memref<1x128xf32, #tpu.memory_space<vmem>>, vector<1x128xf32>
    %c0_3 = arith.constant 0 : index
    %c0_4 = arith.constant 0 : index
    %2 = vector.load %arg4[%c0_3, %c0_4] : memref<1x128xf32, #tpu.memory_space<vmem>>, vector<1x128xf32>
    %c0_5 = arith.constant 0 : index
    %c0_6 = arith.constant 0 : index
    %3 = vector.load %arg5[%c0_5, %c0_6] : memref<128x128xf32, #tpu.memory_space<vmem>>, vector<128x128xf32>
    %c0_7 = arith.constant 0 : index
    %c0_8 = arith.constant 0 : index
    %4 = vector.load %arg6[%c0_7, %c0_8] : memref<1x128xf32, #tpu.memory_space<vmem>>, vector<1x128xf32>
    %c0_9 = arith.constant 0 : index
    %c0_10 = arith.constant 0 : index
    %5 = vector.load %arg7[%c0_9, %c0_10] : memref<128x128xf32, #tpu.memory_space<vmem>>, vector<128x128xf32>
    %c0_11 = arith.constant 0 : index
    %c0_12 = arith.constant 0 : index
    %6 = vector.load %arg8[%c0_11, %c0_12] : memref<1x128xf32, #tpu.memory_space<vmem>>, vector<1x128xf32>
    %cst = arith.constant 1.000000e-03 : f32
    %7 = vector.broadcast %cst : f32 to vector<8x1xf32>
    %8 = arith.mulf %0, %7 : vector<8x1xf32>
    %9 = vector.broadcast %8 : vector<8x1xf32> to vector<8x128xf32>
    %10 = vector.broadcast %1 : vector<1x128xf32> to vector<8x128xf32>
    %11 = arith.mulf %9, %10 : vector<8x128xf32>
    %12 = vector.broadcast %2 : vector<1x128xf32> to vector<8x128xf32>
    %13 = arith.addf %11, %12 : vector<8x128xf32>
    %14 = math.sin %13 : vector<8x128xf32>
    %cst_13 = arith.constant dense<0.000000e+00> : vector<8x128xf32>
    %15 = tpu.matmul %14, %3, %cst_13 {dimension_numbers = #tpu.dot_dimension_numbers<[1], [0], [0], [1], [0, 0, 1, 1], [], []>} : vector<8x128xf32>, vector<128x128xf32>, vector<8x128xf32> -> vector<8x128xf32>
    %16 = vector.broadcast %4 : vector<1x128xf32> to vector<8x128xf32>
    %17 = arith.addf %15, %16 : vector<8x128xf32>
    %cst_14 = arith.constant 5.000000e-01 : f32
    %18 = vector.broadcast %cst_14 : f32 to vector<8x128xf32>
    %19 = arith.mulf %18, %17 : vector<8x128xf32>
    %cst_15 = arith.constant 5.000000e-01 : f32
    %20 = vector.broadcast %cst_15 : f32 to vector<8x128xf32>
    %21 = arith.mulf %20, %17 : vector<8x128xf32>
    %22 = math.tanh %21 : vector<8x128xf32>
    %cst_16 = arith.constant 1.000000e+00 : f32
    %23 = vector.broadcast %cst_16 : f32 to vector<8x128xf32>
    %24 = arith.addf %23, %22 : vector<8x128xf32>
    %25 = arith.mulf %19, %24 : vector<8x128xf32>
    %cst_17 = arith.constant dense<0.000000e+00> : vector<8x128xf32>
    %26 = tpu.matmul %25, %5, %cst_17 {dimension_numbers = #tpu.dot_dimension_numbers<[1], [0], [0], [1], [0, 0, 1, 1], [], []>} : vector<8x128xf32>, vector<128x128xf32>, vector<8x128xf32> -> vector<8x128xf32>
    %27 = vector.broadcast %6 : vector<1x128xf32> to vector<8x128xf32>
    %28 = arith.addf %26, %27 : vector<8x128xf32>
    %c0_18 = arith.constant 0 : index
    %c0_19 = arith.constant 0 : index
    %29 = vector.load %arg1[%c0_18, %c0_19] : memref<8x3xf32, #tpu.memory_space<vmem>>, vector<8x3xf32>
    %c0_20 = arith.constant 0 : index
    %c0_21 = arith.constant 0 : index
    %30 = vector.load %arg9[%c0_20, %c0_21] : memref<3x256xf32, #tpu.memory_space<vmem>>, vector<3x256xf32>
    %c0_22 = arith.constant 0 : index
    %c0_23 = arith.constant 0 : index
    %31 = vector.load %arg10[%c0_22, %c0_23] : memref<128x256xf32, #tpu.memory_space<vmem>>, vector<128x256xf32>
    %c0_24 = arith.constant 0 : index
    %c0_25 = arith.constant 0 : index
    %32 = vector.load %arg11[%c0_24, %c0_25] : memref<1x256xf32, #tpu.memory_space<vmem>>, vector<1x256xf32>
    %c0_26 = arith.constant 0 : index
    %c0_27 = arith.constant 0 : index
    %33 = vector.load %arg12[%c0_26, %c0_27] : memref<256x256xf32, #tpu.memory_space<vmem>>, vector<256x256xf32>
    %c0_28 = arith.constant 0 : index
    %c0_29 = arith.constant 0 : index
    %34 = vector.load %arg13[%c0_28, %c0_29] : memref<1x256xf32, #tpu.memory_space<vmem>>, vector<1x256xf32>
    %c0_30 = arith.constant 0 : index
    %c0_31 = arith.constant 0 : index
    %35 = vector.load %arg14[%c0_30, %c0_31] : memref<256x3xf32, #tpu.memory_space<vmem>>, vector<256x3xf32>
    %c0_32 = arith.constant 0 : index
    %c0_33 = arith.constant 0 : index
    %36 = vector.load %arg15[%c0_32, %c0_33] : memref<1x3xf32, #tpu.memory_space<vmem>>, vector<1x3xf32>
    %cst_34 = arith.constant dense<0.000000e+00> : vector<8x256xf32>
    %37 = tpu.matmul %28, %31, %cst_34 {dimension_numbers = #tpu.dot_dimension_numbers<[1], [0], [0], [1], [0, 0, 1, 1], [], []>} : vector<8x128xf32>, vector<128x256xf32>, vector<8x256xf32> -> vector<8x256xf32>
    %38 = vector.broadcast %32 : vector<1x256xf32> to vector<8x256xf32>
    %39 = arith.addf %37, %38 : vector<8x256xf32>
    %40 = vector.extract_strided_slice %29 {offsets = [0, 0], sizes = [8, 1], strides = [1, 1]} : vector<8x3xf32> to vector<8x1xf32>
    %41 = vector.extract_strided_slice %30 {offsets = [0, 0], sizes = [1, 256], strides = [1, 1]} : vector<3x256xf32> to vector<1x256xf32>
    %42 = vector.broadcast %40 : vector<8x1xf32> to vector<8x256xf32>
    %43 = vector.broadcast %41 : vector<1x256xf32> to vector<8x256xf32>
    %44 = arith.mulf %42, %43 : vector<8x256xf32>
    %45 = vector.extract_strided_slice %29 {offsets = [0, 1], sizes = [8, 1], strides = [1, 1]} : vector<8x3xf32> to vector<8x1xf32>
    %46 = vector.extract_strided_slice %30 {offsets = [1, 0], sizes = [1, 256], strides = [1, 1]} : vector<3x256xf32> to vector<1x256xf32>
    %47 = vector.broadcast %45 : vector<8x1xf32> to vector<8x256xf32>
    %48 = vector.broadcast %46 : vector<1x256xf32> to vector<8x256xf32>
    %49 = arith.mulf %47, %48 : vector<8x256xf32>
    %50 = arith.addf %44, %49 : vector<8x256xf32>
    %51 = vector.extract_strided_slice %29 {offsets = [0, 2], sizes = [8, 1], strides = [1, 1]} : vector<8x3xf32> to vector<8x1xf32>
    %52 = vector.extract_strided_slice %30 {offsets = [2, 0], sizes = [1, 256], strides = [1, 1]} : vector<3x256xf32> to vector<1x256xf32>
    %53 = vector.broadcast %51 : vector<8x1xf32> to vector<8x256xf32>
    %54 = vector.broadcast %52 : vector<1x256xf32> to vector<8x256xf32>
    %55 = arith.mulf %53, %54 : vector<8x256xf32>
    %56 = arith.addf %50, %55 : vector<8x256xf32>
    %57 = arith.addf %39, %56 : vector<8x256xf32>
    %cst_35 = arith.constant 5.000000e-01 : f32
    %58 = vector.broadcast %cst_35 : f32 to vector<8x256xf32>
    %59 = arith.mulf %58, %57 : vector<8x256xf32>
    %cst_36 = arith.constant 5.000000e-01 : f32
    %60 = vector.broadcast %cst_36 : f32 to vector<8x256xf32>
    %61 = arith.mulf %60, %57 : vector<8x256xf32>
    %62 = math.tanh %61 : vector<8x256xf32>
    %cst_37 = arith.constant 1.000000e+00 : f32
    %63 = vector.broadcast %cst_37 : f32 to vector<8x256xf32>
    %64 = arith.addf %63, %62 : vector<8x256xf32>
    %65 = arith.mulf %59, %64 : vector<8x256xf32>
    %cst_38 = arith.constant dense<0.000000e+00> : vector<8x256xf32>
    %66 = tpu.matmul %65, %33, %cst_38 {dimension_numbers = #tpu.dot_dimension_numbers<[1], [0], [0], [1], [0, 0, 1, 1], [], []>} : vector<8x256xf32>, vector<256x256xf32>, vector<8x256xf32> -> vector<8x256xf32>
    %67 = vector.broadcast %34 : vector<1x256xf32> to vector<8x256xf32>
    %68 = arith.addf %66, %67 : vector<8x256xf32>
    %cst_39 = arith.constant 5.000000e-01 : f32
    %69 = vector.broadcast %cst_39 : f32 to vector<8x256xf32>
    %70 = arith.mulf %69, %68 : vector<8x256xf32>
    %cst_40 = arith.constant 5.000000e-01 : f32
    %71 = vector.broadcast %cst_40 : f32 to vector<8x256xf32>
    %72 = arith.mulf %71, %68 : vector<8x256xf32>
    %73 = math.tanh %72 : vector<8x256xf32>
    %cst_41 = arith.constant 1.000000e+00 : f32
    %74 = vector.broadcast %cst_41 : f32 to vector<8x256xf32>
    %75 = arith.addf %74, %73 : vector<8x256xf32>
    %76 = arith.mulf %70, %75 : vector<8x256xf32>
    %cst_42 = arith.constant dense<0.000000e+00> : vector<8x3xf32>
    %77 = tpu.matmul %76, %35, %cst_42 {dimension_numbers = #tpu.dot_dimension_numbers<[1], [0], [0], [1], [0, 0, 1, 1], [], []>} : vector<8x256xf32>, vector<256x3xf32>, vector<8x3xf32> -> vector<8x3xf32>
    %78 = vector.broadcast %36 : vector<1x3xf32> to vector<8x3xf32>
    %79 = arith.addf %77, %78 : vector<8x3xf32>
    %c0_43 = arith.constant 0 : index
    %c0_44 = arith.constant 0 : index
    %80 = vector.load %arg16[%c0_43, %c0_44] : memref<8x3xf32, #tpu.memory_space<vmem>>, vector<8x3xf32>
    tpu.vector_store %arg16[%c0_43, %c0_44], %79 {strides = array<i32>} : memref<8x3xf32, #tpu.memory_space<vmem>>, vector<8x3xf32>,
    return
  }
  func.func @transform_0(%arg0: i32) -> (i32, i32) {
    %c0_i32 = arith.constant 0 : i32
    %c0_i32_0 = arith.constant 0 : i32
    return %arg0, %c0_i32 : i32, i32
  }
  func.func @transform_1(%arg0: i32) -> (i32, i32) {
    %c0_i32 = arith.constant 0 : i32
    %c0_i32_0 = arith.constant 0 : i32
    return %arg0, %c0_i32 : i32, i32
  }
  func.func @transform_2(%arg0: i32) -> (i32, i32) {
    %c0_i32 = arith.constant 0 : i32
    %c0_i32_0 = arith.constant 0 : i32
    %c0_i32_1 = arith.constant 0 : i32
    return %c0_i32, %c0_i32_0 : i32, i32
  }
  func.func @transform_3(%arg0: i32) -> (i32, i32) {
    %c0_i32 = arith.constant 0 : i32
    %c0_i32_0 = arith.constant 0 : i32
    %c0_i32_1 = arith.constant 0 : i32
    return %c0_i32, %c0_i32_0 : i32, i32
  }
  func.func @transform_4(%arg0: i32) -> (i32, i32) {
    %c0_i32 = arith.constant 0 : i32
    %c0_i32_0 = arith.constant 0 : i32
    %c0_i32_1 = arith.constant 0 : i32
    return %c0_i32, %c0_i32_0 : i32, i32
  }
  func.func @transform_5(%arg0: i32) -> (i32, i32) {
    %c0_i32 = arith.constant 0 : i32
    %c0_i32_0 = arith.constant 0 : i32
    %c0_i32_1 = arith.constant 0 : i32
    return %c0_i32, %c0_i32_0 : i32, i32
  }
  func.func @transform_6(%arg0: i32) -> (i32, i32) {
    %c0_i32 = arith.constant 0 : i32
    %c0_i32_0 = arith.constant 0 : i32
    %c0_i32_1 = arith.constant 0 : i32
    return %c0_i32, %c0_i32_0 : i32, i32
  }
  func.func @transform_7(%arg0: i32) -> (i32, i32) {
    %c0_i32 = arith.constant 0 : i32
    %c0_i32_0 = arith.constant 0 : i32
    %c0_i32_1 = arith.constant 0 : i32
    return %c0_i32, %c0_i32_0 : i32, i32
  }
  func.func @transform_8(%arg0: i32) -> (i32, i32) {
    %c0_i32 = arith.constant 0 : i32
    %c0_i32_0 = arith.constant 0 : i32
    %c0_i32_1 = arith.constant 0 : i32
    return %c0_i32, %c0_i32_0 : i32, i32
  }
  func.func @transform_9(%arg0: i32) -> (i32, i32) {
    %c0_i32 = arith.constant 0 : i32
    %c0_i32_0 = arith.constant 0 : i32
    %c0_i32_1 = arith.constant 0 : i32
    return %c0_i32, %c0_i32_0 : i32, i32
  }
  func.func @transform_10(%arg0: i32) -> (i32, i32) {
    %c0_i32 = arith.constant 0 : i32
    %c0_i32_0 = arith.constant 0 : i32
    %c0_i32_1 = arith.constant 0 : i32
    return %c0_i32, %c0_i32_0 : i32, i32
  }
  func.func @transform_11(%arg0: i32) -> (i32, i32) {
    %c0_i32 = arith.constant 0 : i32
    %c0_i32_0 = arith.constant 0 : i32
    %c0_i32_1 = arith.constant 0 : i32
    return %c0_i32, %c0_i32_0 : i32, i32
  }
  func.func @transform_12(%arg0: i32) -> (i32, i32) {
    %c0_i32 = arith.constant 0 : i32
    %c0_i32_0 = arith.constant 0 : i32
    %c0_i32_1 = arith.constant 0 : i32
    return %c0_i32, %c0_i32_0 : i32, i32
  }
  func.func @transform_13(%arg0: i32) -> (i32, i32) {
    %c0_i32 = arith.constant 0 : i32
    %c0_i32_0 = arith.constant 0 : i32
    %c0_i32_1 = arith.constant 0 : i32
    return %c0_i32, %c0_i32_0 : i32, i32
  }
  func.func @transform_14(%arg0: i32) -> (i32, i32) {
    %c0_i32 = arith.constant 0 : i32
    %c0_i32_0 = arith.constant 0 : i32
    %c0_i32_1 = arith.constant 0 : i32
    return %c0_i32, %c0_i32_0 : i32, i32
  }
  func.func @transform_15(%arg0: i32) -> (i32, i32) {
    %c0_i32 = arith.constant 0 : i32
    %c0_i32_0 = arith.constant 0 : i32
    return %arg0, %c0_i32 : i32, i32
  }
}

</mosaic_0001>

<bundles_post_ra>
// kernel: mlp_forward.1
= control target key start
LH: loop header
LB: loop body
LE: loop exit
PB: predicated region body
PF: predicated region fallthrough
CT: control target
= control target key end

     0   :  { %20 = vsyncpa [#allocation3], 0  ;;  %s2028_s0 = inlined_call_operand.vmem [shape: f32[16,3], index: 0, kind: input, shape index: {}]   ;;  %s2029_s1 = inlined_call_operand.vmem [shape: f32[16,1], index: 1, kind: input, shape index: {}]   ;;  %s2030_s2 = inlined_call_operand.vmem [shape: f32[1,128], index: 2, kind: input, shape index: {}]   ;;  %s2031_s3 = inlined_call_operand.vmem [shape: f32[1,128], index: 3, kind: input, shape index: {}]   ;;  %s2032_s4 = inlined_call_operand.hbm [shape: f32[128,128], index: 4, kind: input, shape index: {}]   ;;  %s2033_s5 = inlined_call_operand.vmem [shape: f32[1,128], index: 5, kind: input, shape index: {}]   ;;  %s2034_s6 = inlined_call_operand.hbm [shape: f32[128,128], index: 6, kind: input, shape index: {}]   ;;  %s2035_s7 = inlined_call_operand.vmem [shape: f32[1,128], index: 7, kind: input, shape index: {}]   ;;  %s2036_s8 = inlined_call_operand.vmem [shape: f32[3,256], index: 8, kind: input, shape index: {}]   ;;  %s2037_s9 = inlined_call_operand.vmem [shape: f32[128,256], index: 9, kind: input, shape index: {}]   ;;  %s2038_s10 = inlined_call_operand.vmem [shape: f32[1,256], index: 10, kind: input, shape index: {}]   ;;  %s2039_s11 = inlined_call_operand.vmem [shape: f32[256,256], index: 11, kind: input, shape index: {}]   ;;  %s2040_s12 = inlined_call_operand.vmem [shape: f32[1,256], index: 12, kind: input, shape index: {}]   ;;  %s2041_s13 = inlined_call_operand.vmem [shape: f32[256,3], index: 13, kind: input, shape index: {}]   ;;  %s2042_s14 = inlined_call_operand.vmem [shape: f32[1,3], index: 14, kind: input, shape index: {}]   ;;  %s2043_s15 = inlined_call_operand.vmem [shape: f32[16,3], index: 15, kind: output, shape index: {}]  }
   0x1   :  { %21 = vsyncpa [#allocation5], 0  ;;  %s1497_s18 = smov 0  }
   0x2 LB: > { %s400_s21 = sshll.u32 %s2032_s4, 4  ;;  %s1506_s22 = sadd.s32 4294967295, %s1402_s18   ;;  %s1402_s18 = sphi %s1497_s18, %s27_s18   ;;  %s401_s21 = int_to_ptr.hbm [resolvable:$true] %s400_s21 }
   0x3   : > { %p1254_p0 = scmp.ge.s32.totalorder %s1402_s18, 1  ;;  %p383_p1 = scmp.lt.s32.totalorder %s1402_s18, 3 }
   0x4   : > { %p1284_p2 = scmp.eq.s32.totalorder %s1506_s22, 0  ;;  %s1404_s24 = smov [#allocation2]  }
   0x5   : > { %p1511_p3 = pnand %p1254_p0, %p383_p1  ;;  %s402_s25 = sshll.u32 %s1404_s24, 4  ;;  %s403_s25 = int_to_ptr.vmem [resolvable:$true] %s402_s25 }
   0x6   : > { %s417_s28 = sshll.u32 %s2034_s6, 4  ;;  %s1405_s29 = smov [#allocation4]   ;;  %s418_s28 = int_to_ptr.hbm [resolvable:$true] %s417_s28 }
   0x7   : > { %p1277_p4 = pneg %p1511_p3  ;;  %s419_s30 = sshll.u32 %s1405_s29, 4  ;;  %s420_s30 = int_to_ptr.vmem [resolvable:$true] %s419_s30 }
   0x8   : > { %s1406_s16 = smov 128   ;;  %s1407_s17 = smov 8  }
   0x9   : > { %p1278_p5 = pnand %p1284_p2, %p1277_p4  ;;  %473 = sbr.rel (%p1511_p3) target bundleno = 936 (0x3a8), region = 80 }
   0xb   : > { %1280 = dma.hbm_to_vmem [thread:$0]  (!%p1278_p5), %s401_s21, 2048, %s403_s25, [#allocation3], %s1406_s16, %s1406_s16, %s1407_s17  }
   0xc   : > { %1283 = dma.hbm_to_vmem [thread:$0]  (!%p1278_p5), %s418_s28, 2048, %s420_s30, [#allocation5], %s1406_s16, %s1406_s16, %s1407_s17  }
   0xe   : > { %1393 = dma.done.wait (%p1284_p2), [#allocation3], 2048  }
   0xf   : > { %1395 = vsyncadd (%p1284_p2), [#allocation3], 4294965248 }
  0x10   : > { %1397 = dma.done.wait (%p1284_p2), [#allocation5], 2048  }
  0x11   : > { %1399 = vsyncadd (%p1284_p2), [#allocation5], 4294965248  ;;  %p529_p6 = scmp.lt.s32.totalorder %s1506_s22, 1  ;;  %v1408_v0 = vmov 0   ;;  %v1409_v1 = vmov 1   ;;  %v1410_v5 = vmov 2  }
  0x12   : > { %1309 = vset.pattern.permute.xlu0 %v1408_v0  ;;  %1310 = vset.pattern.permute.xlu1 %v1409_v1  ;;  %v559_v6 = vld [vmem:[#allocation2 + $0x78] sm:$0xff]  ;;  %v558_v7 = vld [vmem:[#allocation2 + $0x70] sm:$0xff]  ;;  %v557_v8 = vld [vmem:[#allocation2 + $0x68] sm:$0xff]  ;;  %v1411_v38 = vmov 683565275  }
  0x13   : > { %s2048_s22 = smov (!%p529_p6, %s1506_s22), 1  ;;  %750 = vmatpush.msra.mxu0 %v559_v6  ;;  %v556_v9 = vld [vmem:[#allocation2 + $0x60] sm:$0xff]  ;;  %v555_v10 = vld [vmem:[#allocation2 + $0x58] sm:$0xff]  ;;  %v554_v11 = vld [vmem:[#allocation2 + $0x50] sm:$0xff]  ;;  %v1412_v40 = vmov 2475754826  }
  0x14   : > { %s1535_s19 = sshll.u32 %s2048_s22, 3  ;;  %v553_v12 = vld [vmem:[#allocation2 + $0x48] sm:$0xff]  ;;  %v1313_v13 = vld [vmem:[%s2030_s2] ss:$0 sm:$0xff]  ;;  %v551_v16 = vld [vmem:[#allocation2 + $0x38] sm:$0xff] }
  0x15   : > { %s536_s23 = scalar_lea.vmem %s2029_s1, %s1535_s19  ;;  %s532_s26 = scalar_lea.vmem %s2028_s0, %s1535_s19  ;;  %751 = vmatpush.msra.mxu0 %v558_v7  ;;  %v552_v14 = vld [vmem:[#allocation2 + $0x40] sm:$0xff]  ;;  %v550_v19 = vld [vmem:[#allocation2 + $0x30] sm:$0xff]  ;;  %v549_v21 = vld [vmem:[#allocation2 + $0x28] sm:$0xff]  ;;  %v1413_v43 = vmov 2131351028  }
  0x16   : > { %v541_v2 = vld [vmem:[%s536_s23] sm:$0xff]  ;;  %v547_v25 = vld [vmem:[#allocation2 + $0x18] sm:$0xff]  ;;  %v546_v27 = vld [vmem:[#allocation2 + $0x10] sm:$0xff]  ;;  %v1414_v46 = vmov 2102212464   ;;  %s540_s27 = scalar_lea.vmem %s2043_s15, %s1535_s19 }
  0x17   : > { %v797_v3 = vld [vmem:[%s532_s26] sm:$0xff]  ;;  %v578_v4 = vmul.f32 0.001, %v541_v2  ;;  %752 = vmatpush.msra.mxu0 %v557_v8  ;;  %v545_v30 = vld [vmem:[#allocation2 + $0x8] sm:$0xff]  ;;  %v1415_v49 = vmov 920167782  }
  0x18   : > { %990 = vperm.xlu1 %1310, %v797_v3   ;;  %v1314_v15 = vld [vmem:[%s2031_s3] ss:$0 sm:$0xff]  ;;  %v1416_v52 = vmov 1326507024  }
  0x19   : > { %581 = vperm.xlu0 %1309, %v578_v4   ;;  %753 = vmatpush.msra.mxu0 %v556_v9  ;;  %v548_v23 = vld [vmem:[#allocation2 + $0x20] sm:$0xff] }
  0x1a   : > { %v544_v31 = vld [vmem:[#allocation2] sm:$0xff] }
  0x1b   : > { %754 = vmatpush.msra.mxu0 %v555_v10 }
  0x1d   : > { %755 = vmatpush.msra.mxu0 %v554_v11 }
  0x1f   : > { %756 = vmatpush.msra.mxu0 %v553_v12 }
  0x20   : > { %1311 = vset.pattern.permute.xlu1 %v1410_v5 }
  0x21   : > { %1004 = vperm.xlu1 %1311, %v797_v3   ;;  %977 = vperm.xlu0 %1309, %v797_v3  }
  0x22   : > { %757 = vmatpush.msra.mxu0 %v552_v14 }
  0x24   : > { %758 = vmatpush.msra.mxu0 %v551_v16 }
  0x26   : > { %759 = vmatpush.msra.mxu0 %v550_v19 }
  0x28   : > { %760 = vmatpush.msra.mxu0 %v549_v21 }
  0x29   : > { %1312 = vset.pattern.permute.xlu0 %v1410_v5 }
  0x2a   : > { %761 = vmatpush.msra.mxu0 %v548_v23 }
  0x2c   : > { %762 = vmatpush.msra.mxu0 %v547_v25 }
  0x2e   : > { %763 = vmatpush.msra.mxu0 %v546_v27 }
  0x30   : > { %764 = vmatpush.msra.mxu0 %v545_v30 }
  0x32   : > { %765 = vmatpush.msra.mxu0 %v544_v31 }
  0x8b   : > { %v582_v17 = vpop.permute.xlu0 %581 }
  0x8c   : > { %v587_v18 = vmul.f32 %v1313_v13, %v582_v17 }
  0x8e   : > { %v1551_v20 = vadd.f32 %v1314_v15, %v587_v18 }
  0x90   : > { %v595_v22 = vand.u32 2139095040, %v1551_v20  ;;  %v592_v28 = vand.u32 2147483647, %v1551_v20  ;;  %vm594_vm12 = vcmp.lt.s32.totalorder %v1551_v20, 0 }
  0x92   : > { %v596_v24 = vshrl.u32 %v595_v22, 23  ;;  %v599_v33 = vand.u32 8388607, %v592_v28  ;;  %vm1609_vm13 = vcmp.le.f32.partialorder %v592_v28, 0.7853982 }
  0x94   : > { %v1264_v26 = vadd.s32 4294967169, %v596_v24  ;;  %v600_v37 = vor.u32 8388608, %v599_v33 }
  0x96   : > { %v602_v29 = vadd.s32 1, %v1264_v26  ;;  %v1568_v59 = vshll.u32 %v600_v37, 8 }
  0x98   : > { %vm603_vm0 = vcmp.gt.s32.totalorder %v602_v29, 0  ;;  %v641_v5 = vand.u32 65535, %v1568_v59  ;;  %v642_v6 = vshrl.u32 %v1568_v59, 16 }
  0x99   : > { %v604_v32 = vsel %vm603_vm0, %v602_v29, 0 }
  0x9a   : > { %v606_v34 = vand.u32 31, %v604_v32  ;;  %v1559_v36 = vshrl.u32 %v604_v32, 5 }
  0x9c   : > { %v1557_v35 = vsub.s32 32, %v606_v34  ;;  %v609_v39 = vshll.u32 %v1411_v38, %v606_v34  ;;  %v612_v41 = vshll.u32 %v1412_v40, %v606_v34  ;;  %v615_v45 = vshll.u32 %v1413_v43, %v606_v34 }
  0x9d   : > { %v618_v48 = vshll.u32 %v1414_v46, %v606_v34  ;;  %v621_v51 = vshll.u32 %v1415_v49, %v606_v34  ;;  %vm624_vm1 = vcmp.lt.s32.totalorder %v1559_v36, 1  ;;  %vm627_vm2 = vcmp.lt.s32.totalorder %v1559_v36, 4 }
  0x9e   : > { %v610_v42 = vshrl.u32 %v1412_v40, %v1557_v35  ;;  %v613_v44 = vshrl.u32 %v1413_v43, %v1557_v35  ;;  %v616_v47 = vshrl.u32 %v1414_v46, %v1557_v35  ;;  %v619_v50 = vshrl.u32 %v1415_v49, %v1557_v35 }
  0x9f   : > { %v622_v53 = vshrl.u32 %v1416_v52, %v1557_v35  ;;  %vm626_vm3 = vcmp.lt.s32.totalorder %v1559_v36, 3  ;;  %vm625_vm4 = vcmp.lt.s32.totalorder %v1559_v36, 2  ;;  %v608_v33 = vshrl.u32 %v1411_v38, %v1557_v35 }
  0xa0   : > { %v611_v54 = vor.u32 %v610_v42, %v609_v39  ;;  %v614_v55 = vor.u32 %v613_v44, %v612_v41  ;;  %v617_v56 = vor.u32 %v616_v47, %v615_v45  ;;  %v620_v57 = vor.u32 %v619_v50, %v618_v48 }
  0xa1   : > { %v623_v58 = vor.u32 %v622_v53, %v621_v51 }
  0xa2   : > { %v632_v60 = vsel %vm624_vm1, %v611_v54, %v614_v55  ;;  %v636_v61 = vsel %vm624_vm1, %v614_v55, %v617_v56  ;;  %v633_v62 = vsel %vm627_vm2, %v620_v57, 920167782  ;;  %v629_v30 = vsel %vm627_vm2, %v617_v56, 2102212464 }
  0xa3   : > { %v637_v63 = vsel %vm627_vm2, %v623_v58, 1326507024  ;;  %v634_v1 = vsel %vm626_vm3, %v617_v56, %v633_v62  ;;  %v628_v42 = vsel %vm624_vm1, %v608_v33, %v611_v54  ;;  %v630_v43 = vsel %vm626_vm3, %v614_v55, %v629_v30 }
  0xa4   : > { %v638_v2 = vsel %vm626_vm3, %v620_v57, %v637_v63  ;;  %v635_v3 = vsel %vm625_vm4, %v632_v60, %v634_v1  ;;  %v631_v35 = vsel %vm625_vm4, %v628_v42, %v630_v43  ;;  %vm735_vm1 = vweird.f32 %v1551_v20 }
  0xa5   : > { %v639_v4 = vsel %vm625_vm4, %v636_v61, %v638_v2  ;;  %v665_v9 = vand.u32 65535, %v635_v3  ;;  %v666_v10 = vshrl.u32 %v635_v3, 16  ;;  %v685_v50 = vmul.u32 %v1568_v59, %v631_v35 }
  0xa6   : > { %v643_v7 = vand.u32 65535, %v639_v4  ;;  %v644_v8 = vshrl.u32 %v639_v4, 16  ;;  %vm1163_vm2 = vcmask 23552  }
  0xa7   : > { %v668_v13 = vmul.u32 %v666_v10, %v641_v5  ;;  %v669_v14 = vmul.u32 %v665_v9, %v642_v6  ;;  %v667_v18 = vmul.u32 %v665_v9, %v641_v5  ;;  %v670_v23 = vmul.u32 %v666_v10, %v642_v6  ;;  %v574_v9 = vld [vmem:[#allocation4 + $0x68] sm:$0xff] }
  0xa8   : > { %v646_v11 = vmul.u32 %v644_v8, %v641_v5  ;;  %v647_v12 = vmul.u32 %v643_v7, %v642_v6  ;;  %v645_v15 = vmul.u32 %v643_v7, %v641_v5  ;;  %v648_v17 = vmul.u32 %v644_v8, %v642_v6  ;;  %v576_v6 = vld [vmem:[#allocation4 + $0x78] sm:$0xff]  ;;  %v575_v7 = vld [vmem:[#allocation4 + $0x70] sm:$0xff] }
  0xa9   : > { %v671_v19 = vshll.u32 %v668_v13, 16  ;;  %v673_v25 = vshll.u32 %v669_v14, 16  ;;  %v672_v40 = vshrl.u32 %v668_v13, 16  ;;  %v674_v46 = vshrl.u32 %v669_v14, 16  ;;  %777 = vmatpush.msra.mxu1 %v576_v6  ;;  %v572_v14 = vld [vmem:[#allocation4 + $0x58] sm:$0xff]  ;;  %v816_v6 = vld [vmem:[%s2037_s9 + $0x88] sm:$0xff] }
  0xaa   : > { %v649_v16 = vshll.u32 %v646_v11, 16  ;;  %v651_v21 = vshll.u32 %v647_v12, 16  ;;  %v650_v34 = vshrl.u32 %v646_v11, 16  ;;  %v652_v44 = vshrl.u32 %v647_v12, 16  ;;  %v573_v12 = vld [vmem:[#allocation4 + $0x60] sm:$0xff] }
  0xab   : > { %vm675_vm6 = vc.u32 %v667_v18, %v671_v19  ;;  %v677_v26 = vadd.s32 %v671_v19, %v667_v18  ;;  %778 = vmatpush.msra.mxu1 %v575_v7  ;;  %v1315_v7 = vld [vmem:[%s2033_s5] ss:$0 sm:$0xff] }
  0xac   : > { %vm653_vm5 = vc.u32 %v645_v15, %v649_v16  ;;  %v655_v22 = vadd.s32 %v649_v16, %v645_v15  ;;  %v676_v29 = vsel %vm675_vm6, 1, %v1408_v0  ;;  %v571_v16 = vld [vmem:[#allocation4 + $0x50] sm:$0xff] }
  0xad   : > { %v654_v24 = vsel %vm653_vm5, 1, %v1408_v0  ;;  %v678_v32 = vadd.s32 %v676_v29, %v670_v23  ;;  %vm679_vm8 = vc.u32 %v677_v26, %v673_v25  ;;  %v681_v49 = vadd.s32 %v677_v26, %v673_v25  ;;  %779 = vmatpush.msra.mxu1 %v574_v9  ;;  %v814_v9 = vld [vmem:[%s2037_s9 + $0x78] sm:$0xff] }
  0xae   : > { %v656_v27 = vadd.s32 %v654_v24, %v648_v17  ;;  %vm657_vm7 = vc.u32 %v655_v22, %v651_v21  ;;  %v680_v39 = vsel %vm679_vm8, 1, %v1408_v0  ;;  %v570_v22 = vld [vmem:[#allocation4 + $0x48] sm:$0xff]  ;;  %v569_v24 = vld [vmem:[#allocation4 + $0x40] sm:$0xff] }
  0xaf   : > { %v658_v31 = vsel %vm657_vm7, 1, %v1408_v0  ;;  %v682_v41 = vadd.s32 %v680_v39, %v678_v32  ;;  %780 = vmatpush.msra.mxu1 %v573_v12  ;;  %v812_v12 = vld [vmem:[%s2037_s9 + $0x68] sm:$0xff]  ;;  %v807_v17 = vld [vmem:[%s2037_s9 + $0x40] sm:$0xff] }
  0xb0   : > { %v660_v37 = vadd.s32 %v658_v31, %v656_v27 }
  0xb1   : > { %v683_v47 = vadd.s32 %v682_v41, %v672_v40  ;;  %781 = vmatpush.msra.mxu1 %v572_v14  ;;  %v809_v14 = vld [vmem:[%s2037_s9 + $0x50] sm:$0xff] }
  0xb2   : > { %v661_v45 = vadd.s32 %v660_v37, %v650_v34 }
  0xb3   : > { %v684_v38 = vadd.s32 %v683_v47, %v674_v46  ;;  %782 = vmatpush.msra.mxu1 %v571_v16 }
  0xb4   : > { %v662_v48 = vadd.s32 %v661_v45, %v652_v44 }
  0xb5   : > { %v688_v0 = vadd.s32 1, %v684_v38  ;;  %783 = vmatpush.msra.mxu1 %v570_v22  ;;  %v803_v22 = vld [vmem:[%s2037_s9 + $0x20] sm:$0xff] }
  0xb6   : > { %vm687_vm9 = vc.u32 %v662_v48, %v681_v49  ;;  %v686_v36 = vadd.s32 %v681_v49, %v662_v48 }
  0xb7   : > { %v689_v51 = vsel %vm687_vm9, %v688_v0, %v684_v38  ;;  %784 = vmatpush.msra.mxu1 %v569_v24  ;;  %v568_v38 = vld [vmem:[#allocation4 + $0x38] sm:$0xff]  ;;  %v567_v0 = vld [vmem:[#allocation4 + $0x30] sm:$0xff] }
  0xb8   : > { %v690_v52 = vadd.s32 %v689_v51, %v685_v50  ;;  %v566_v50 = vld [vmem:[#allocation4 + $0x28] sm:$0xff]  ;;  %v565_v51 = vld [vmem:[#allocation4 + $0x20] sm:$0xff] }
  0xb9   : > { %785 = vmatpush.msra.mxu1 %v568_v38  ;;  %v886_v38 = vld [vmem:[%s2039_s11 + $0x1b0] sm:$0xff] }
  0xba   : > { %v691_v53 = vadd.s32 536870912, %v690_v52 }
  0xbb   : > { %786 = vmatpush.msra.mxu1 %v567_v0  ;;  %v855_v0 = vld [vmem:[%s2039_s11 + $0xb8] sm:$0xff] }
  0xbc   : > { %v692_v54 = vshrl.u32 %v691_v53, 30  ;;  %v563_v53 = vld [vmem:[#allocation4 + $0x10] sm:$0xff] }
  0xbd   : > { %787 = vmatpush.msra.mxu1 %v566_v50  ;;  %v887_v50 = vld [vmem:[%s2039_s11 + $0x1b8] sm:$0xff] }
  0xbe   : > { %v693_v56 = vshll.u32 %v692_v54, 30  ;;  %v716_v19 = vsub.s32 4, %v692_v54 }
  0xbf   : > { %788 = vmatpush.msra.mxu1 %v565_v51  ;;  %v852_v51 = vld [vmem:[%s2039_s11 + $0xa0] sm:$0xff] }
  0xc0   : > { %v694_v55 = vsub.s32 %v690_v52, %v693_v56  ;;  %v717_v27 = vsel %vm594_vm12, %v716_v19, %v692_v54  ;;  %v564_v52 = vld [vmem:[#allocation4 + $0x18] sm:$0xff]  ;;  %v562_v54 = vld [vmem:[#allocation4 + $0x8] sm:$0xff]  ;;  %v561_v56 = vld [vmem:[#allocation4] sm:$0xff] }
  0xc1   : > { %v719_v30 = vsel %vm1609_vm13, 0, %v717_v27  ;;  %789 = vmatpush.msra.mxu1 %v564_v52  ;;  %v805_v19 = vld [vmem:[%s2037_s9 + $0x30] sm:$0xff]  ;;  %v884_v52 = vld [vmem:[%s2039_s11 + $0x1a0] sm:$0xff] }
  0xc2   : > { %vm695_vm10 = vcmp.lt.s32.totalorder %v694_v55, 0  ;;  %v696_v57 = vsub.s32 0, %v694_v55  ;;  %v736_v37 = vadd.s32 3, %v719_v30  ;;  %v801_v27 = vld [vmem:[%s2037_s9 + $0x10] sm:$0xff]  ;;  %v800_v30 = vld [vmem:[%s2037_s9 + $0x8] sm:$0xff] }
  0xc3   : > { %790 = vmatpush.msra.mxu1 %v563_v53  ;;  %v853_v53 = vld [vmem:[%s2039_s11 + $0xa8] sm:$0xff] }
  0xc4   : > { %v697_v58 = vsel %vm695_vm10, %v696_v57, %v694_v55  ;;  %v737_v43 = vand.u32 3, %v736_v37  ;;  %v827_v57 = vld [vmem:[%s2037_s9 + $0xe0] sm:$0xff] }
  0xc5   : > { %v698_v60 = vclz %v697_v58  ;;  %791 = vmatpush.msra.mxu1 %v562_v54  ;;  %v828_v58 = vld [vmem:[%s2037_s9 + $0xe8] sm:$0xff]  ;;  %v860_v37 = vld [vmem:[%s2039_s11 + $0xe0] sm:$0xff] }
  0xc6   : > { %vm739_vm14 = vcmp.eq.s32.totalorder %v737_v43, 0  ;;  %vm742_vm15 = vcmp.eq.s32.totalorder %v737_v43, 2  ;;  %vm738_vm0 = vcmp.lt.s32.totalorder %v737_v43, 2  ;;  %v890_v43 = vld [vmem:[%s2039_s11 + $0x1d0] sm:$0xff]  ;;  %v885_v54 = vld [vmem:[%s2039_s11 + $0x1a8] sm:$0xff] }
  0xc7   : > { %v1265_v61 = vadd.s32 4294967294, %v698_v60  ;;  %792 = vmatpush.msra.mxu1 %v561_v56  ;;  %v825_v60 = vld [vmem:[%s2037_s9 + $0xd0] sm:$0xff] }
  0xc8   : > { %v850_v56 = vld [vmem:[%s2039_s11 + $0x90] sm:$0xff] }
  0xc9   : > { %vm1266_vm11 = vcmp.lt.s32.totalorder %v1265_v61, 0 }
  0xca   : > { %v701_v62 = vsel %vm1266_vm11, 0, %v1265_v61  ;;  %v826_v61 = vld [vmem:[%s2037_s9 + $0xd8] sm:$0xff] }
  0xcb   : > { %v702_v63 = vsub.s32 32, %v701_v62  ;;  %v706_v1 = vsub.s32 4294967266, %v701_v62  ;;  %v703_v2 = vshll.u32 %v694_v55, %v701_v62  ;;  %v830_v55 = vld [vmem:[%s2037_s9 + $0xf8] sm:$0xff]  ;;  %v823_v62 = vld [vmem:[%s2037_s9 + $0xc0] sm:$0xff] }
  0xcc   : > { %955 = vmatpush.msra.mxu3 %v830_v55  ;;  %v851_v55 = vld [vmem:[%s2039_s11 + $0x98] sm:$0xff] }
  0xcd   : > { %v704_v3 = vshrl.u32 %v686_v36, %v702_v63  ;;  %v707_v4 = vadd.s32 127, %v706_v1  ;;  %v824_v36 = vld [vmem:[%s2037_s9 + $0xc8] sm:$0xff]  ;;  %v821_v63 = vld [vmem:[%s2037_s9 + $0xb0] sm:$0xff]  ;;  %v822_v1 = vld [vmem:[%s2037_s9 + $0xb8] sm:$0xff] }
  0xce   : > { %956 = vmatpush.msra.mxu3 %v828_v58  ;;  %v1316_v58 = vld [vmem:[%s2035_s7] ss:$0 sm:$0xff] }
  0xcf   : > { %v705_v59 = vor.u32 %v704_v3, %v703_v2  ;;  %v708_v5 = vshll.u32 %v707_v4, 23  ;;  %v819_v2 = vld [vmem:[%s2037_s9 + $0xa0] sm:$0xff]  ;;  %v820_v3 = vld [vmem:[%s2037_s9 + $0xa8] sm:$0xff]  ;;  %v817_v4 = vld [vmem:[%s2037_s9 + $0x90] sm:$0xff] }
  0xd0   : > { %957 = vmatpush.msra.mxu3 %v826_v61 }
  0xd1   : > { %v709_v8 = vor.u32 4788187, %v708_v5  ;;  %v712_v11 = vcvt.s32.f32 %v705_v59  ;;  %v818_v59 = vld [vmem:[%s2037_s9 + $0x98] sm:$0xff]  ;;  %v815_v5 = vld [vmem:[%s2037_s9 + $0x80] sm:$0xff] }
  0xd2   : > { %958 = vmatpush.msra.mxu3 %v824_v36  ;;  %v880_v36 = vld [vmem:[%s2039_s11 + $0x180] sm:$0xff] }
  0xd3   : > { %v710_v10 = vand.u32 2147483647, %v709_v8  ;;  %v813_v8 = vld [vmem:[%s2037_s9 + $0x70] sm:$0xff] }
  0xd4   : > { %959 = vmatpush.msra.mxu3 %v822_v1  ;;  %v881_v1 = vld [vmem:[%s2039_s11 + $0x188] sm:$0xff] }
  0xd5   : > { %v713_v13 = vmul.f32 %v712_v11, %v710_v10  ;;  %v811_v11 = vld [vmem:[%s2037_s9 + $0x60] sm:$0xff] }
  0xd6   : > { %960 = vmatpush.msra.mxu3 %v820_v3  ;;  %v878_v3 = vld [vmem:[%s2039_s11 + $0x170] sm:$0xff] }
  0xd7   : > { %v714_v15 = vxor.u32 2147483648, %v713_v13 }
  0xd8   : > { %961 = vmatpush.msra.mxu3 %v818_v59  ;;  %v879_v59 = vld [vmem:[%s2039_s11 + $0x178] sm:$0xff] }
  0xd9   : > { %v715_v18 = vsel %vm594_vm12, %v714_v15, %v713_v13  ;;  %v810_v15 = vld [vmem:[%s2037_s9 + $0x58] sm:$0xff] }
  0xda   : > { %v718_v21 = vsel %vm1609_vm13, %v1551_v20, %v715_v18  ;;  %v829_v20 = vld [vmem:[%s2037_s9 + $0xf0] sm:$0xff]  ;;  %962 = vmatpush.msra.mxu3 %v816_v6  ;;  %v808_v18 = vld [vmem:[%s2037_s9 + $0x48] sm:$0xff]  ;;  %v876_v6 = vld [vmem:[%s2039_s11 + $0x160] sm:$0xff] }
  0xdb   : > { %v720_v23 = vmul.f32 %v718_v21, %v718_v21  ;;  %935 = vmatpush.msra.mxu2 %v829_v20  ;;  %v882_v20 = vld [vmem:[%s2039_s11 + $0x190] sm:$0xff] }
  0xdc   : > { %963 = vmatpush.msra.mxu3 %v814_v9  ;;  %v842_v9 = vld [vmem:[%s2039_s11 + $0x50] sm:$0xff] }
  0xdd   : > { %v721_v25 = vmul.f32 -0.001358992, %v720_v23  ;;  %v728_v26 = vmul.f32 -0.00019511016, %v720_v23  ;;  %936 = vmatpush.msra.mxu2 %v827_v57  ;;  %v883_v57 = vld [vmem:[%s2039_s11 + $0x198] sm:$0xff] }
  0xde   : > { %964 = vmatpush.msra.mxu3 %v812_v12  ;;  %v875_v12 = vld [vmem:[%s2039_s11 + $0x158] sm:$0xff] }
  0xdf   : > { %v722_v29 = vadd.f32 0.041655596, %v721_v25  ;;  %v729_v28 = vadd.f32 0.008332121, %v728_v26  ;;  %937 = vmatpush.msra.mxu2 %v825_v60 }
  0xe0   : > { %965 = vmatpush.msra.mxu3 %v810_v15  ;;  %v841_v15 = vld [vmem:[%s2039_s11 + $0x48] sm:$0xff] }
  0xe1   : > { %v723_v31 = vmul.f32 %v722_v29, %v720_v23  ;;  %v730_v32 = vmul.f32 %v729_v28, %v720_v23  ;;  %938 = vmatpush.msra.mxu2 %v823_v62  ;;  %v802_v29 = vld [vmem:[%s2037_s9 + $0x18] sm:$0xff]  ;;  %v799_v28 = vld [vmem:[%s2037_s9] sm:$0xff] }
  0xe2   : > { %966 = vmatpush.msra.mxu3 %v808_v18  ;;  %v848_v62 = vld [vmem:[%s2039_s11 + $0x80] sm:$0xff]  ;;  %v870_v18 = vld [vmem:[%s2039_s11 + $0x130] sm:$0xff] }
  0xe3   : > { %v724_v33 = vadd.f32 -0.4999988, %v723_v31  ;;  %v731_v34 = vadd.f32 -0.16666654, %v730_v32  ;;  %939 = vmatpush.msra.mxu2 %v821_v63  ;;  %v862_v31 = vld [vmem:[%s2039_s11 + $0xf0] sm:$0xff]  ;;  %v849_v63 = vld [vmem:[%s2039_s11 + $0x88] sm:$0xff] }
  0xe4   : > { %v894_v32 = vld [vmem:[%s2039_s11 + $0x1f0] sm:$0xff]  ;;  %1032 = vmatpush.msrb.mxu0 %v862_v31  ;;  %v991_v31 = vpop.permute.xlu1 %990 }
  0xe5   : > { %v725_v39 = vmul.f32 %v724_v33, %v720_v23  ;;  %v732_v40 = vmul.f32 %v731_v34, %v720_v23  ;;  %940 = vmatpush.msra.mxu2 %v819_v2  ;;  %v804_v23 = vld [vmem:[%s2037_s9 + $0x28] sm:$0xff]  ;;  %v863_v33 = vld [vmem:[%s2039_s11 + $0xf8] sm:$0xff]  ;;  %1052 = vmatpush.msrb.mxu1 %v894_v32  ;;  %v846_v2 = vld [vmem:[%s2039_s11 + $0x70] sm:$0xff] }
  0xe6   : > { %v895_v34 = vld [vmem:[%s2039_s11 + $0x1f8] sm:$0xff]  ;;  %1033 = vmatpush.msrb.mxu0 %v860_v37  ;;  %v832_v32 = vld [vmem:[%s2039_s11] sm:$0xff]  ;;  %v865_v37 = vld [vmem:[%s2039_s11 + $0x108] sm:$0xff] }
  0xe7   : > { %v726_v41 = vadd.f32 1.0, %v725_v39  ;;  %v733_v42 = vadd.f32 1.0, %v732_v40  ;;  %941 = vmatpush.msra.mxu2 %v817_v4  ;;  %v892_v39 = vld [vmem:[%s2039_s11 + $0x1e0] sm:$0xff]  ;;  %v861_v40 = vld [vmem:[%s2039_s11 + $0xe8] sm:$0xff]  ;;  %v847_v4 = vld [vmem:[%s2039_s11 + $0x78] sm:$0xff] }
  0xe8   : > { %1053 = vmatpush.msrb.mxu1 %v892_v39 }
  0xe9   : > { %v734_v44 = vmul.f32 %v733_v42, %v718_v21  ;;  %v743_v45 = vxor.u32 2147483648, %v726_v41  ;;  %942 = vmatpush.msra.mxu2 %v815_v5  ;;  %v806_v21 = vld [vmem:[%s2037_s9 + $0x38] sm:$0xff]  ;;  %v858_v42 = vld [vmem:[%s2039_s11 + $0xd0] sm:$0xff]  ;;  %v844_v5 = vld [vmem:[%s2039_s11 + $0x60] sm:$0xff] }
  0xea   : > { %967 = vmatpush.msra.mxu3 %v806_v21  ;;  %1034 = vmatpush.msrb.mxu0 %v858_v42  ;;  %v871_v21 = vld [vmem:[%s2039_s11 + $0x138] sm:$0xff] }
  0xeb   : > { %v740_v46 = vxor.u32 2147483648, %v734_v44  ;;  %v744_v48 = vsel %vm742_vm15, %v743_v45, %v734_v44  ;;  %943 = vmatpush.msra.mxu2 %v813_v8  ;;  %v859_v44 = vld [vmem:[%s2039_s11 + $0xd8] sm:$0xff]  ;;  %1054 = vmatpush.msrb.mxu1 %v890_v43  ;;  %v877_v8 = vld [vmem:[%s2039_s11 + $0x168] sm:$0xff] }
  0xec   : > { %968 = vmatpush.msra.mxu3 %v804_v23  ;;  %v891_v45 = vld [vmem:[%s2039_s11 + $0x1d8] sm:$0xff]  ;;  %v868_v23 = vld [vmem:[%s2039_s11 + $0x120] sm:$0xff] }
  0xed   : > { %v741_v47 = vsel %vm739_vm14, %v726_v41, %v740_v46  ;;  %944 = vmatpush.msra.mxu2 %v811_v11  ;;  %v893_v41 = vld [vmem:[%s2039_s11 + $0x1e8] sm:$0xff]  ;;  %v856_v46 = vld [vmem:[%s2039_s11 + $0xc0] sm:$0xff]  ;;  %v843_v11 = vld [vmem:[%s2039_s11 + $0x58] sm:$0xff] }
  0xee   : > { %v745_v49 = vsel %vm738_vm0, %v741_v47, %v744_v48  ;;  %969 = vmatpush.msra.mxu3 %v802_v29  ;;  %v888_v47 = vld [vmem:[%s2039_s11 + $0x1c0] sm:$0xff]  ;;  %v857_v48 = vld [vmem:[%s2039_s11 + $0xc8] sm:$0xff]  ;;  %1035 = vmatpush.msrb.mxu0 %v856_v46  ;;  %v912_v43 = vld [vmem:[%s2041_s13 + $0x78] sm:$0xff] }
  0xef   : > { %v746_v35 = vsel %vm735_vm1, nan, %v745_v49  ;;  %945 = vmatpush.msra.mxu2 %v809_v14  ;;  %v889_v49 = vld [vmem:[%s2039_s11 + $0x1c8] sm:$0xff]  ;;  %1055 = vmatpush.msrb.mxu1 %v888_v47  ;;  %v872_v14 = vld [vmem:[%s2039_s11 + $0x140] sm:$0xff]  ;;  %v928_v47 = vld [vmem:[%s2041_s13 + $0xf8] sm:$0xff] }
  0xf0   : > { %766 = vmatmul.f32.vlgmr.msra.gmra.mxu0 %v746_v35  ;;  %970 = vmatpush.msra.mxu3 %v800_v30  ;;  %v854_v35 = vld [vmem:[%s2039_s11 + $0xb0] sm:$0xff]  ;;  %v798_v29 = vld [vmem:[%s2036_s8] sm:$0x77]  ;;  %v867_v30 = vld [vmem:[%s2039_s11 + $0x118] sm:$0xff] }
  0xf1   : > { %946 = vmatpush.msra.mxu2 %v807_v17  ;;  %1036 = vmatpush.msrb.mxu0 %v854_v35  ;;  %v838_v17 = vld [vmem:[%s2039_s11 + $0x30] sm:$0xff]  ;;  %v993_v39 = vperm.slane %v798_v29, 1  ;;  %v982_v42 = vperm.slane %v798_v29, 4  ;;  %v1008_v46 = vperm.slane %v798_v29, 6 }
  0xf2   : > { %1092 = vmatpush.msrb.mxu3 %v895_v34  ;;  %1056 = vmatpush.msrb.mxu1 %v886_v38  ;;  %v833_v34 = vld [vmem:[%s2039_s11 + $0x8] sm:$0xff] }
  0xf3   : > { %947 = vmatpush.msra.mxu2 %v805_v19  ;;  %1037 = vmatpush.msrb.mxu0 %v852_v51  ;;  %v839_v19 = vld [vmem:[%s2039_s11 + $0x38] sm:$0xff]  ;;  %v986_v38 = vperm.slane %v982_v42, 0  ;;  %v978_v51 = vpop.permute.xlu0 %977  ;;  %v917_v42 = vld [vmem:[%s2041_s13 + $0xa0] sm:$0xff] }
  0xf4   : > { %1093 = vmatpush.msrb.mxu3 %v893_v41  ;;  %1057 = vmatpush.msrb.mxu1 %v884_v52  ;;  %v981_v41 = vperm.slane %v798_v29, 0  ;;  %v926_v52 = vld [vmem:[%s2041_s13 + $0xe8] sm:$0xff] }
  0xf5   : > { %948 = vmatpush.msra.mxu2 %v803_v22  ;;  %1038 = vmatpush.msrb.mxu0 %v850_v56  ;;  %v836_v22 = vld [vmem:[%s2039_s11 + $0x20] sm:$0xff]  ;;  %v1012_v56 = vperm.slane %v1008_v46, 2  ;;  %v914_v46 = vld [vmem:[%s2041_s13 + $0x88] sm:$0xff] }
  0xf6   : > { %1094 = vmatpush.msrb.mxu3 %v891_v45  ;;  %1058 = vmatpush.msrb.mxu1 %v882_v20  ;;  %v1007_v45 = vperm.slane %v798_v29, 2  ;;  %v985_v35 = vperm.slane %v981_v41, 0  ;;  %v925_v20 = vld [vmem:[%s2041_s13 + $0xe0] sm:$0xff]  ;;  %v898_v41 = vld [vmem:[%s2041_s13 + $0x8] sm:$0xff] }
  0xf7   : > { %949 = vmatpush.msra.mxu2 %v801_v27  ;;  %1039 = vmatpush.msrb.mxu0 %v848_v62  ;;  %v866_v27 = vld [vmem:[%s2039_s11 + $0x110] sm:$0xff]  ;;  %v908_v62 = vld [vmem:[%s2041_s13 + $0x58] sm:$0xff] }
  0xf8   : > { %1095 = vmatpush.msrb.mxu3 %v889_v49  ;;  %1059 = vmatpush.msrb.mxu1 %v880_v36  ;;  %v831_v36 = vld [vmem:[%s2038_s10] sm:$0x3] }
  0xf9   : > { %950 = vmatpush.msra.mxu2 %v799_v28  ;;  %1040 = vmatpush.msrb.mxu0 %v846_v2  ;;  %v835_v28 = vld [vmem:[%s2039_s11 + $0x18] sm:$0xff] }
  0xfa   : > { %1096 = vmatpush.msrb.mxu3 %v887_v50  ;;  %1060 = vmatpush.msrb.mxu1 %v878_v3  ;;  %v927_v50 = vld [vmem:[%s2041_s13 + $0xf0] sm:$0xff] }
  0xfb   : > { %1072 = vmatpush.msrb.mxu2 %v863_v33  ;;  %1041 = vmatpush.msrb.mxu0 %v844_v5  ;;  %v864_v33 = vld [vmem:[%s2039_s11 + $0x100] sm:$0xff]  ;;  %v932_v5 = vperm.slane %v831_v36, 1 }
  0xfc   : > { %1097 = vmatpush.msrb.mxu3 %v885_v54  ;;  %1061 = vmatpush.msrb.mxu1 %v876_v6  ;;  %v1011_v54 = vperm.slane %v1007_v45, 2  ;;  %v906_v6 = vld [vmem:[%s2041_s13 + $0x48] sm:$0xff]  ;;  %v915_v45 = vld [vmem:[%s2041_s13 + $0x90] sm:$0xff] }
  0xfd   : > { %1073 = vmatpush.msrb.mxu2 %v861_v40  ;;  %1042 = vmatpush.msrb.mxu0 %v842_v9  ;;  %v994_v40 = vperm.slane %v798_v29, 5  ;;  %v903_v29 = vld [vmem:[%s2041_s13 + $0x30] sm:$0xff] }
  0xfe   : > { %1098 = vmatpush.msrb.mxu3 %v883_v57 }
  0xff   : > { %1074 = vmatpush.msrb.mxu2 %v859_v44  ;;  %v911_v44 = vld [vmem:[%s2041_s13 + $0x70] sm:$0xff]  ;;  %v998_v49 = vperm.slane %v994_v40, 1  ;;  %v918_v40 = vld [vmem:[%s2041_s13 + $0xa8] sm:$0xff] }
 0x100   : > { %1099 = vmatpush.msrb.mxu3 %v881_v1 }
 0x101   : > { %1075 = vmatpush.msrb.mxu2 %v857_v48  ;;  %v997_v48 = vperm.slane %v993_v39, 1  ;;  %v1000_v57 = vmul.f32 %v998_v49, %v991_v31  ;;  %v899_v39 = vld [vmem:[%s2041_s13 + $0x10] sm:$0xff] }
 0x102   : > { %1100 = vmatpush.msrb.mxu3 %v879_v59  ;;  %v931_v59 = vperm.slane %v831_v36, 0 }
 0x103   : > { %1076 = vmatpush.msrb.mxu2 %v855_v0  ;;  %v910_v0 = vld [vmem:[%s2041_s13 + $0x68] sm:$0xff] }
 0x104   : > { %1101 = vmatpush.msrb.mxu3 %v877_v8 }
 0x105   : > { %1077 = vmatpush.msrb.mxu2 %v853_v53  ;;  %v909_v53 = vld [vmem:[%s2041_s13 + $0x60] sm:$0xff] }
 0x106   : > { %1102 = vmatpush.msrb.mxu3 %v875_v12 }
 0x107   : > { %1078 = vmatpush.msrb.mxu2 %v851_v55  ;;  %v999_v55 = vmul.f32 %v997_v48, %v991_v31  ;;  %v921_v31 = vld [vmem:[%s2041_s13 + $0xc0] sm:$0xff] }
 0x108   : > { %v896_v48 = vld [vmem:[%s2040_s12] sm:$0x3] }
 0x109   : > { %1079 = vmatpush.msrb.mxu2 %v849_v63  ;;  %v907_v63 = vld [vmem:[%s2041_s13 + $0x50] sm:$0xff]  ;;  %v1028_v49 = vperm.slane %v896_v48, 0 }
 0x10b   : > { %1080 = vmatpush.msrb.mxu2 %v847_v4 }
 0x16d   : > { %v767_v10 = vpop.f32.mrf.mxu0 }
 0x16e   : > { %v768_v13 = vadd.f32 %v1315_v7, %v767_v10  ;;  %v845_v7 = vld [vmem:[%s2039_s11 + $0x68] sm:$0xff]  ;;  %v874_v10 = vld [vmem:[%s2039_s11 + $0x150] sm:$0xff] }
 0x16f   : > { %1081 = vmatpush.msrb.mxu2 %v845_v7  ;;  %1062 = vmatpush.msrb.mxu1 %v874_v10 }
 0x170   : > { %v770_v16 = vmul.f32 0.5, %v768_v13  ;;  %v840_v13 = vld [vmem:[%s2039_s11 + $0x40] sm:$0xff] }
 0x171   : > { %1082 = vmatpush.msrb.mxu2 %v843_v11  ;;  %1043 = vmatpush.msrb.mxu0 %v840_v13 }
 0x172   : > { %1318 = vtanh.f32 %v770_v16  ;;  %1063 = vmatpush.msrb.mxu1 %v872_v14 }
 0x173   : > { %1083 = vmatpush.msrb.mxu2 %v841_v15  ;;  %1044 = vmatpush.msrb.mxu0 %v838_v17 }
 0x174   : > { %1064 = vmatpush.msrb.mxu1 %v870_v18 }
 0x175   : > { %1084 = vmatpush.msrb.mxu2 %v839_v19  ;;  %1045 = vmatpush.msrb.mxu0 %v836_v22 }
 0x176   : > { %1065 = vmatpush.msrb.mxu1 %v868_v23 }
 0x178   : > { %v1319_v24 = vpop.eup %1318  ;;  %1066 = vmatpush.msrb.mxu1 %v866_v27  ;;  %v923_v27 = vld [vmem:[%s2041_s13 + $0xd0] sm:$0xff] }
 0x179   : > { %v772_v25 = vadd.f32 1.0, %v1319_v24  ;;  %v837_v24 = vld [vmem:[%s2039_s11 + $0x28] sm:$0xff] }
 0x17a   : > { %1085 = vmatpush.msrb.mxu2 %v837_v24  ;;  %1067 = vmatpush.msrb.mxu1 %v864_v33  ;;  %v905_v24 = vld [vmem:[%s2041_s13 + $0x40] sm:$0xff]  ;;  %v920_v33 = vld [vmem:[%s2041_s13 + $0xb8] sm:$0xff] }
 0x17b   : > { %v773_v26 = vmul.f32 %v772_v25, %v770_v16  ;;  %v873_v16 = vld [vmem:[%s2039_s11 + $0x148] sm:$0xff] }
 0x17c   : > { %1103 = vmatpush.msrb.mxu3 %v873_v16  ;;  %v869_v25 = vld [vmem:[%s2039_s11 + $0x128] sm:$0xff]  ;;  %1086 = vmatpush.msrb.mxu2 %v835_v28 }
 0x17d   : > { %793 = vmatmul.f32.vlgmr.msra.gmra.mxu1 %v773_v26  ;;  %v834_v26 = vld [vmem:[%s2039_s11 + $0x10] sm:$0xff]  ;;  %v922_v28 = vld [vmem:[%s2041_s13 + $0xc8] sm:$0xff] }
 0x17e   : > { %1104 = vmatpush.msrb.mxu3 %v871_v21  ;;  %1046 = vmatpush.msrb.mxu0 %v834_v26  ;;  %v904_v26 = vld [vmem:[%s2041_s13 + $0x38] sm:$0xff] }
 0x17f   : > { %1087 = vmatpush.msrb.mxu2 %v833_v34  ;;  %1143 = vmatpush.msra.mxu1 %v928_v47  ;;  %v900_v34 = vld [vmem:[%s2041_s13 + $0x18] sm:$0xff]  ;;  %v913_v47 = vld [vmem:[%s2041_s13 + $0x80] sm:$0xff] }
 0x180   : > { %1105 = vmatpush.msrb.mxu3 %v869_v25  ;;  %1047 = vmatpush.msrb.mxu0 %v832_v32  ;;  %v924_v25 = vld [vmem:[%s2041_s13 + $0xd8] sm:$0xff]  ;;  %v901_v32 = vld [vmem:[%s2041_s13 + $0x20] sm:$0xff] }
 0x181   : > { %1144 = vmatpush.msra.mxu1 %v927_v50 }
 0x182   : > { %1106 = vmatpush.msrb.mxu3 %v867_v30  ;;  %1123 = vmatpush.msra.mxu0 %v912_v43  ;;  %v902_v30 = vld [vmem:[%s2041_s13 + $0x28] sm:$0xff]  ;;  %v897_v43 = vld [vmem:[%s2041_s13] sm:$0xff] }
 0x183   : > { %1145 = vmatpush.msra.mxu1 %v926_v52 }
 0x184   : > { %1107 = vmatpush.msrb.mxu3 %v865_v37  ;;  %1124 = vmatpush.msra.mxu0 %v911_v44  ;;  %v919_v37 = vld [vmem:[%s2041_s13 + $0xb0] sm:$0xff]  ;;  %v916_v44 = vld [vmem:[%s2041_s13 + $0x98] sm:$0xff] }
 0x185   : > { %1146 = vmatpush.msra.mxu1 %v925_v20 }
 0x186   : > { %1125 = vmatpush.msra.mxu0 %v910_v0 }
 0x187   : > { %1147 = vmatpush.msra.mxu1 %v924_v25 }
 0x188   : > { %1126 = vmatpush.msra.mxu0 %v909_v53 }
 0x189   : > { %1148 = vmatpush.msra.mxu1 %v923_v27 }
 0x18a   : > { %1127 = vmatpush.msra.mxu0 %v908_v62 }
 0x18b   : > { %1149 = vmatpush.msra.mxu1 %v922_v28 }
 0x18c   : > { %1128 = vmatpush.msra.mxu0 %v907_v63  ;;  %v1317_v63 = vld [vmem:[%s2042_s14] ss:$0 sm:$0xff] }
 0x18d   : > { %1150 = vmatpush.msra.mxu1 %v921_v31 }
 0x18e   : > { %1129 = vmatpush.msra.mxu0 %v906_v6 }
 0x18f   : > { %1151 = vmatpush.msra.mxu1 %v920_v33 }
 0x190   : > { %1130 = vmatpush.msra.mxu0 %v905_v24 }
 0x191   : > { %1152 = vmatpush.msra.mxu1 %v919_v37 }
 0x192   : > { %1131 = vmatpush.msra.mxu0 %v904_v26 }
 0x193   : > { %1153 = vmatpush.msra.mxu1 %v918_v40 }
 0x194   : > { %1132 = vmatpush.msra.mxu0 %v903_v29 }
 0x195   : > { %1154 = vmatpush.msra.mxu1 %v917_v42 }
 0x196   : > { %1133 = vmatpush.msra.mxu0 %v902_v30 }
 0x197   : > { %1155 = vmatpush.msra.mxu1 %v916_v44 }
 0x198   : > { %1134 = vmatpush.msra.mxu0 %v901_v32 }
 0x199   : > { %1156 = vmatpush.msra.mxu1 %v915_v45 }
 0x19a   : > { %1135 = vmatpush.msra.mxu0 %v900_v34 }
 0x19b   : > { %1157 = vmatpush.msra.mxu1 %v914_v46 }
 0x19c   : > { %1136 = vmatpush.msra.mxu0 %v899_v39 }
 0x19d   : > { %1158 = vmatpush.msra.mxu1 %v913_v47 }
 0x19e   : > { %1137 = vmatpush.msra.mxu0 %v898_v41 }
 0x1a0   : > { %1138 = vmatpush.msra.mxu0 %v897_v43 }
 0x1fa   : > { %v794_v60 = vpop.f32.mrf.mxu1 }
 0x1fb   : > { %v795_v61 = vadd.f32 %v1316_v58, %v794_v60  ;;  %v987_v58 = vmul.f32 %v985_v35, %v978_v51  ;;  %v988_v60 = vmul.f32 %v986_v38, %v978_v51  ;;  %v1029_v51 = vperm.slane %v896_v48, 1 }
 0x1fd   : > { %951 = vmatmul.f32.vlgmr.msra.gmra.mxu2 %v795_v61  ;;  %971 = vmatmul.f32.vlgmr.msra.gmra.mxu3 %v795_v61  ;;  %v1005_v61 = vpop.permute.xlu1 %1004  ;;  %v1001_v3 = vadd.f32 %v999_v55, %v987_v58  ;;  %v1002_v4 = vadd.f32 %v1000_v57, %v988_v60 }
 0x1fe   : > { %v1013_v1 = vmul.f32 %v1011_v54, %v1005_v61  ;;  %v1014_v2 = vmul.f32 %v1012_v56, %v1005_v61 }
 0x200   : > { %v1015_v9 = vadd.f32 %v1013_v1, %v1001_v3  ;;  %v1016_v10 = vadd.f32 %v1014_v2, %v1002_v4 }
 0x280   : > { %v952_v7 = vpop.f32.mrf.mxu2  ;;  %v972_v8 = vpop.f32.mrf.mxu3 }
 0x281   : > { %v953_v11 = vadd.f32 %v952_v7, %v931_v59  ;;  %v973_v12 = vadd.f32 %v972_v8, %v932_v5 }
 0x283   : > { %v1017_v13 = vadd.f32 %v1015_v9, %v953_v11  ;;  %v1018_v14 = vadd.f32 %v1016_v10, %v973_v12 }
 0x285   : > { %v1019_v15 = vmul.f32 0.5, %v1017_v13  ;;  %v1020_v16 = vmul.f32 0.5, %v1018_v14 }
 0x287   : > { %1320 = vtanh.f32 %v1019_v15 }
 0x288   : > { %1322 = vtanh.f32 %v1020_v16 }
 0x28d   : > { %v1321_v17 = vpop.eup %1320 }
 0x28e   : > { %v1323_v18 = vpop.eup %1322  ;;  %v1023_v19 = vadd.f32 1.0, %v1321_v17 }
 0x28f   : > { %v1024_v21 = vadd.f32 1.0, %v1323_v18 }
 0x290   : > { %v1025_v22 = vmul.f32 %v1023_v19, %v1019_v15 }
 0x291   : > { %v1026_v23 = vmul.f32 %v1024_v21, %v1020_v16 }
 0x292   : > { %1048 = vmatmul.f32.vlgmr.msrb.gmra.mxu0 %v1025_v22  ;;  %1088 = vmatmul.f32.vlgmr.msrb.gmra.mxu2 %v1025_v22 }
 0x293   : > { %1068 = vmatmul.f32.vlgmr.msrb.gmra.mxu1 %v1026_v23  ;;  %1108 = vmatmul.f32.vlgmr.msrb.gmra.mxu3 %v1026_v23 }
 0x30f   : > { %v1049_v35 = vpop.f32.mrf.mxu0 }
 0x310   : > { %v1050_v38 = vadd.f32 %v1049_v35, %v1028_v49  ;;  %v1069_v0 = vpop.f32.mrf.mxu1 }
 0x312   : > { %v1070_v50 = vadd.f32 %v1069_v0, %v1050_v38 }
 0x314   : > { %v1112_v52 = vmul.f32 0.5, %v1070_v50 }
 0x315   : > { %v1089_v53 = vpop.f32.mrf.mxu2 }
 0x316   : > { %1324 = vtanh.f32 %v1112_v52  ;;  %v1090_v54 = vadd.f32 %v1089_v53, %v1029_v51  ;;  %v1109_v56 = vpop.f32.mrf.mxu3 }
 0x318   : > { %v1110_v20 = vadd.f32 %v1109_v56, %v1090_v54 }
 0x31a   : > { %v1113_v55 = vmul.f32 0.5, %v1110_v20 }
 0x31c   : > { %v1325_v57 = vpop.eup %1324  ;;  %1326 = vtanh.f32 %v1113_v55 }
 0x31d   : > { %v1116_v58 = vadd.f32 1.0, %v1325_v57 }
 0x31f   : > { %v1118_v60 = vmul.f32 %v1116_v58, %v1112_v52 }
 0x321   : > { %1139 = vmatmul.f32.vlgmr.msra.gmra.mxu0 %v1118_v60 }
 0x322   : > { %v1327_v61 = vpop.eup %1326 }
 0x323   : > { %v1117_v62 = vadd.f32 1.0, %v1327_v61 }
 0x325   : > { %v1119_v36 = vmul.f32 %v1117_v62, %v1113_v55 }
 0x327   : > { %1159 = vmatmul.f32.vlgmr.msra.gmra.mxu1 %v1119_v36 }
 0x39e   : > { %v1140_v1 = vpop.f32.mrf.mxu0 }
 0x39f   : > { %v1141_v2 = vadd.f32 %v1317_v63, %v1140_v1 }
 0x3a4   : > { %v1160_v3 = vpop.f32.mrf.mxu1 }
 0x3a5   : > { %v1161_v4 = vadd.f32 %v1160_v3, %v1141_v2 }
 0x3a7   : > { %1164 = vst.msk [vmem:[%s540_s27] sm:$0xff] %vm1163_vm2, %v1161_v4 }
 0x3a8 PF: > { %s27_s18 = sadd.s32 1, %s1402_s18  }
 0x3a9   : > { %p24_p7 = scmp.ge.s32.totalorder %s27_s18, 4  }
 0x3ab   :  { %26 = sbr.rel (!%p24_p7) target bundleno = 2 (0x2), region = 122 }
 0x3b0   :  { %1184 = vsyncpa [#allocation3], 1 }
 0x3b1   :  { %1186 = vsyncpa [#allocation3 + $0x1], 1 }
 0x3b2   :  { %1187 = vsyncpa [#allocation5], 1 }

</bundles_post_ra>
